<compile_context>
chip_gen: v7x
topology: tpu7x:2x2x1
jax: 0.10.0
libtpu: 0.0.40
codegen_flags: <defaults>
</compile_context>

<pallas_src>
import math
import numpy as np
import jax
import jax.numpy as jnp
from jax.experimental import pallas as pl
from jax.experimental.pallas import tpu as pltpu


# ---------------------------------------------------------------------------
# Dense bilinear-resize matrices (torch F.interpolate, align_corners=False:
# src = (dst + 0.5) * scale - 0.5, clamped to >= 0, indices clamped at in-1).
# ---------------------------------------------------------------------------
def bilinear_resize_matrix(in_size: int, out_size: int) -> np.ndarray:
    scale = in_size / out_size
    mat = np.zeros((out_size, in_size), dtype=np.float32)
    for o in range(out_size):
        src = (o + 0.5) * scale - 0.5
        src = max(src, 0.0)
        i0 = min(int(np.floor(src)), in_size - 1)
        i1 = min(i0 + 1, in_size - 1)
        lam = src - i0
        mat[o, i0] += 1.0 - lam
        mat[o, i1] += lam
    return mat


def _resize_cost(h_in, lane_in, h_out, lane_out, h_first):
    if h_first:
        return h_out * h_in * lane_in + h_out * lane_in * lane_out
    return h_in * lane_in * lane_out + h_out * h_in * lane_out


def _choose_h_first(h_in, lane_in, h_out, lane_out):
    return (_resize_cost(h_in, lane_in, h_out, lane_out, True)
            < _resize_cost(h_in, lane_in, h_out, lane_out, False))


def _cdiv(a, b):
    return -(-a // b)


# ---------------------------------------------------------------------------
# Kernel factory: lane-packed blocks, 2 MXU matmuls per input per grid step.
# ---------------------------------------------------------------------------
def _build_kernel(h_first):
    hfA, hfB, hfD = h_first

    def resize(block, wh, ww, first_h):
        if first_h:
            tmp = jnp.dot(wh, block, preferred_element_type=jnp.float32)
            return jnp.dot(tmp, ww, preferred_element_type=jnp.float32)
        tmp = jnp.dot(block, ww, preferred_element_type=jnp.float32)
        return jnp.dot(wh, tmp, preferred_element_type=jnp.float32)

    def kernel(w_ref,                                    # SMEM (3,) normalized weights
               dispA_ref, depthB_ref, dispD_ref,         # (H_in, G*W_in) lane-packed
               whA_ref, wwA_ref, whB_ref, wwB_ref, whD_ref, wwD_ref,
               avg_ref, dA_ref, dB_ref, dD_ref):         # (H_out, G*width) lane-packed
        w1 = w_ref[0]
        w2 = w_ref[1]
        w3 = w_ref[2]
        # One wide, exact f32 reciprocal per disparity input per step (hoisted).
        da = resize(1.0 / dispA_ref[...], whA_ref[...], wwA_ref[...], hfA)
        db = resize(depthB_ref[...], whB_ref[...], wwB_ref[...], hfB)   # AdaBins emits depth
        dd = resize(1.0 / dispD_ref[...], whD_ref[...], wwD_ref[...], hfD)
        avg_ref[...] = w1 * da + w2 * db + w3 * dd       # weights pre-normalized
        dA_ref[...] = da
        dB_ref[...] = db
        dD_ref[...] = dd

    return kernel


# ---------------------------------------------------------------------------
# Wrapper (eval-mode forward of WeightedAverageDepth, given subnet predictions).
# ---------------------------------------------------------------------------
def weighted_average_depth(disp_A, depth_B_raw, disp_D, w1, w2, w3,
                           height, width, maps_per_step=None):
    B = disp_A.shape[0]
    assert disp_A.shape[1] == 1 and depth_B_raw.shape[1] == 1 and disp_D.shape[1] == 1

    dA = disp_A.reshape(B, *disp_A.shape[2:]).astype(jnp.float32)
    dB = depth_B_raw.reshape(B, *depth_B_raw.shape[2:]).astype(jnp.float32)
    dD = disp_D.reshape(B, *disp_D.shape[2:]).astype(jnp.float32)

    HA, WA = dA.shape[1:]
    HB, WB = dB.shape[1:]
    HD, WD = dD.shape[1:]

    # ---------------- G selection: lane-dense packing + VMEM budget --------
    g0 = 128 // math.gcd(width, 128)     # minimal G keeping G*width % 128 == 0

    def nbytes(*shape):
        return int(np.prod(shape)) * 4

    def per_step_bytes(g):
        lin_a, lin_b, lin_d = g * WA, g * WB, g * WD
        lout = g * width
        io = (nbytes(HA, lin_a) + nbytes(HB, lin_b) + nbytes(HD, lin_d)
              + 4 * nbytes(height, lout))
        mats = (nbytes(height, HA) + nbytes(lin_a, lout)
                + nbytes(height, HB) + nbytes(lin_b, lout)
                + nbytes(height, HD) + nbytes(lin_d, lout))
        interm = (3 * nbytes(height, lout)
                  + nbytes(max(HA, HB, HD), max(lin_a, lin_b, lin_d)))
        return 2 * io + mats + interm    # inputs/outputs double-buffered

    try:
        vmem_cap = int(pltpu.get_tpu_info().vmem_capacity_bytes)
    except Exception:
        vmem_cap = 64 * 1024 * 1024      # conservative (v7x per-TC)
    budget = int(0.45 * vmem_cap)

    if maps_per_step is not None:
        G = g0 * _cdiv(int(maps_per_step), g0)
    else:
        G = g0
        while True:
            g2 = G + g0
            if G >= B:
                break                                        # one step covers the batch
            if g2 * width > 2048:
                break                                        # keep block-diag Ww sane
            if per_step_bytes(g2) > budget:
                break                                        # stay double-buffered
            if _cdiv(B, g2) < 2 and _cdiv(B, G) >= 2:
                break                                        # keep >=2 steps (megacore)
            G = g2

    nsteps = _cdiv(B, G)
    B_pad = nsteps * G
    LW = G * width

    # ---------------- host-side lane packing (single fused XLA transform) --
    def pack_lanes(x, fill):
        if B_pad != B:
            pad = jnp.full((B_pad - B,) + x.shape[1:], fill, x.dtype)
            x = jnp.concatenate([x, pad], axis=0)
        h_in, w_in = x.shape[1], x.shape[2]
        x = x.reshape(nsteps, G, h_in, w_in).transpose(0, 2, 1, 3)
        return x.reshape(nsteps, h_in, G * w_in)

    dA_p = pack_lanes(dA, 1.0)     # disparity pad=1 keeps 1/x finite
    dB_p = pack_lanes(dB, 0.0)
    dD_p = pack_lanes(dD, 1.0)

    # ---------------- resize matrices (Wh shared, Ww block-diagonal) -------
    def wh_mat(h_in):
        return jnp.asarray(bilinear_resize_matrix(h_in, height))        # (H_out, h_in)

    def ww_blockdiag(w_in):
        m = bilinear_resize_matrix(w_in, width).T                        # (w_in, width)
        big = np.zeros((G * w_in, G * width), dtype=np.float32)
        for g in range(G):
            big[g * w_in:(g + 1) * w_in, g * width:(g + 1) * width] = m
        return jnp.asarray(big)                                          # (G*w_in, G*width)

    whA, wwA = wh_mat(HA), ww_blockdiag(WA)
    whB, wwB = wh_mat(HB), ww_blockdiag(WB)
    whD, wwD = wh_mat(HD), ww_blockdiag(WD)

    # Static per-input choice of the cheaper matmul ordering.
    h_first = (_choose_h_first(HA, G * WA, height, LW),
               _choose_h_first(HB, G * WB, height, LW),
               _choose_h_first(HD, G * WD, height, LW))

    # Fold the 1/(w1+w2+w3) normalization into the weights (scalar, host side).
    w = jnp.asarray([w1, w2, w3], dtype=jnp.float32)
    w = w / jnp.sum(w)

    # ---------------- specs / cost / pallas_call ----------------------------
    def in_spec(h_in, lane):
        return pl.BlockSpec((pl.Squeezed(), h_in, lane), lambda s: (s, 0, 0))

    def mat_spec(m):
        return pl.BlockSpec(m.shape, lambda s: (0, 0))

    out_spec = pl.BlockSpec((pl.Squeezed(), height, LW), lambda s: (s, 0, 0))
    out_struct = jax.ShapeDtypeStruct((nsteps, height, LW), jnp.float32)

    def rflops(h_in, lane_in, hf):
        return 2 * _resize_cost(h_in, lane_in, height, LW, hf)

    cost = pl.CostEstimate(
        flops=nsteps * (rflops(HA, G * WA, h_first[0])
                        + rflops(HB, G * WB, h_first[1])
                        + rflops(HD, G * WD, h_first[2])
                        + 6 * height * LW),
        transcendentals=nsteps * (HA * G * WA + HD * G * WD),
        bytes_accessed=4 * (dA_p.size + dB_p.size + dD_p.size
                            + whA.size + wwA.size + whB.size + wwB.size
                            + whD.size + wwD.size
                            + 4 * nsteps * height * LW),
    )

    est = per_step_bytes(G)
    vmem_limit = int(min(max(2 * est, 32 * 1024 * 1024), int(0.9 * vmem_cap)))

    grid_spec = pltpu.PrefetchScalarGridSpec(
        num_scalar_prefetch=0,
        grid=(nsteps,),
        in_specs=[
            pl.BlockSpec(memory_space=pltpu.SMEM),       # normalized weights (3,)
            in_spec(HA, G * WA),                         # disp_A packed
            in_spec(HB, G * WB),                         # depth_B_raw packed
            in_spec(HD, G * WD),                         # disp_D packed
            mat_spec(whA), mat_spec(wwA),
            mat_spec(whB), mat_spec(wwB),
            mat_spec(whD), mat_spec(wwD),
        ],
        out_specs=[out_spec] * 4,
    )

    kernel = _build_kernel(h_first)

    avg, da_o, db_o, dd_o = pl.pallas_call(
        kernel,
        out_shape=(out_struct,) * 4,
        grid_spec=grid_spec,
        compiler_params=pltpu.CompilerParams(
            dimension_semantics=("parallel",),           # steps independent -> megacore
            vmem_limit_bytes=vmem_limit,
        ),
        cost_estimate=cost,
    )(w, dA_p, dB_p, dD_p, whA, wwA, whB, wwB, whD, wwD)

    # Unpack: compact reshape/transpose (no padded lanes ever touch HBM).
    def unpack(t):
        t = t.reshape(nsteps, height, G, width).transpose(0, 2, 1, 3)
        return t.reshape(B_pad, height, width)[:B].reshape(B, 1, height, width)

    return unpack(avg), unpack(da_o), unpack(db_o), unpack(dd_o)


# ---------------------------------------------------------------------------
# Pure-JAX reference for the same eval-mode math (sanity check).
# ---------------------------------------------------------------------------
def reference(disp_A, depth_B_raw, disp_D, w1, w2, w3, height, width):
    def rs(img, h_in, w_in):
        wh = jnp.asarray(bilinear_resize_matrix(h_in, height))
        ww = jnp.asarray(bilinear_resize_matrix(w_in, width))
        return jnp.einsum("oh,bchw,pw->bcop", wh, img, ww)

    da = rs(1.0 / disp_A, disp_A.shape[2], disp_A.shape[3])
    db = rs(depth_B_raw, depth_B_raw.shape[2], depth_B_raw.shape[3])
    dd = rs(1.0 / disp_D, disp_D.shape[2], disp_D.shape[3])
    avg = (w1 * da + w2 * db + w3 * dd) / (w1 + w2 + w3)
    return avg, da, db, dd


if __name__ == "__main__":
    key = jax.random.PRNGKey(0)
    B, C, H, W = 2, 3, 16, 16          # args.height = args.width = 16
    k1, k2, k3 = jax.random.split(key, 3)

    x = jax.random.uniform(k1, (B, C, H, W), jnp.float32)

    # TODO(synk): DispNetS, UnetAdaptiveBins, ResnetEncoder+DepthDecoder are external
    # sub-networks whose definitions are not in the provided source; deterministic
    # stand-in predictions (at the resolutions those nets would emit) are used instead.
    disp_A = 0.1 + 0.9 * jax.nn.sigmoid(x.mean(axis=1, keepdims=True))          # [B,1,16,16]
    depth_B = 1.0 + 5.0 * jax.random.uniform(k2, (B, 1, 13, 17), jnp.float32)    # AdaBins head
    disp_D = 0.1 + 0.9 * jax.random.uniform(k3, (B, 1, 12, 20), jnp.float32)     # monodepth2 disp
    w1, w2, w3 = 0.5, 0.3, 0.2

    avg, dA, dB, dD = weighted_average_depth(disp_A, depth_B, disp_D, w1, w2, w3, H, W)
    jax.block_until_ready(avg)

    r_avg, r_dA, r_dB, r_dD = reference(disp_A, depth_B, disp_D, w1, w2, w3, H, W)
    np.testing.assert_allclose(np.asarray(avg), np.asarray(r_avg), rtol=1e-4, atol=1e-5)
    np.testing.assert_allclose(np.asarray(dA), np.asarray(r_dA), rtol=1e-4, atol=1e-5)
    np.testing.assert_allclose(np.asarray(dB), np.asarray(r_dB), rtol=1e-4, atol=1e-5)
    np.testing.assert_allclose(np.asarray(dD), np.asarray(r_dD), rtol=1e-4, atol=1e-5)

    print("KERNEL_OK")
</pallas_src>

<mosaic_0001>
module attributes {stable_mosaic.version = 11 : i64} {
  func.func @kernel(%arg0: i32, %arg1: memref<3xf32, #tpu.memory_space<smem>>, %arg2: memref<1x16x128xf32, #tpu.memory_space<vmem>>, %arg3: memref<1x13x136xf32, #tpu.memory_space<vmem>>, %arg4: memref<1x12x160xf32, #tpu.memory_space<vmem>>, %arg5: memref<16x16xf32, #tpu.memory_space<vmem>>, %arg6: memref<128x128xf32, #tpu.memory_space<vmem>>, %arg7: memref<16x13xf32, #tpu.memory_space<vmem>>, %arg8: memref<136x128xf32, #tpu.memory_space<vmem>>, %arg9: memref<16x12xf32, #tpu.memory_space<vmem>>, %arg10: memref<160x128xf32, #tpu.memory_space<vmem>>, %arg11: memref<1x16x128xf32, #tpu.memory_space<vmem>>, %arg12: memref<1x16x128xf32, #tpu.memory_space<vmem>>, %arg13: memref<1x16x128xf32, #tpu.memory_space<vmem>>, %arg14: memref<1x16x128xf32, #tpu.memory_space<vmem>>) attributes {dimension_semantics = [#tpu.dimension_semantics<parallel>], iteration_bounds = array<i64: 1>, scalar_prefetch = 0 : i64, scratch_operands = 0 : i64, tpu.core_type = #tpu.core_type<tc>, window_params = [{transform_indices = @transform_0, window_bounds = array<i64: 3>}, {transform_indices = @transform_1, window_bounds = array<i64: 1, 16, 128>}, {transform_indices = @transform_2, window_bounds = array<i64: 1, 13, 136>}, {transform_indices = @transform_3, window_bounds = array<i64: 1, 12, 160>}, {pipeline_mode = #tpu.pipeline_mode<synchronous>, transform_indices = @transform_4, window_bounds = array<i64: 16, 16>}, {pipeline_mode = #tpu.pipeline_mode<synchronous>, transform_indices = @transform_5, window_bounds = array<i64: 128, 128>}, {pipeline_mode = #tpu.pipeline_mode<synchronous>, transform_indices = @transform_6, window_bounds = array<i64: 16, 13>}, {pipeline_mode = #tpu.pipeline_mode<synchronous>, transform_indices = @transform_7, window_bounds = array<i64: 136, 128>}, {pipeline_mode = #tpu.pipeline_mode<synchronous>, transform_indices = @transform_8, window_bounds = array<i64: 16, 12>}, {pipeline_mode = #tpu.pipeline_mode<synchronous>, transform_indices = @transform_9, window_bounds = array<i64: 160, 128>}, {transform_indices = @transform_10, window_bounds = array<i64: 1, 16, 128>}, {transform_indices = @transform_11, window_bounds = array<i64: 1, 16, 128>}, {transform_indices = @transform_12, window_bounds = array<i64: 1, 16, 128>}, {transform_indices = @transform_13, window_bounds = array<i64: 1, 16, 128>}]} {
    %c0 = arith.constant 0 : index
    %0 = memref.load %arg1[%c0] : memref<3xf32, #tpu.memory_space<smem>>
    %c1 = arith.constant 1 : index
    %1 = memref.load %arg1[%c1] : memref<3xf32, #tpu.memory_space<smem>>
    %c2 = arith.constant 2 : index
    %2 = memref.load %arg1[%c2] : memref<3xf32, #tpu.memory_space<smem>>
    %c0_0 = arith.constant 0 : index
    %c0_1 = arith.constant 0 : index
    %c0_2 = arith.constant 0 : index
    %3 = vector.load %arg2[%c0_0, %c0_1, %c0_2] : memref<1x16x128xf32, #tpu.memory_space<vmem>>, vector<1x16x128xf32>
    %4 = vector.shape_cast %3 : vector<1x16x128xf32> to vector<16x128xf32>
    %cst = arith.constant 1.000000e+00 : f32
    %5 = vector.broadcast %cst : f32 to vector<16x128xf32>
    %6 = arith.divf %5, %4 : vector<16x128xf32>
    %c0_3 = arith.constant 0 : index
    %c0_4 = arith.constant 0 : index
    %7 = vector.load %arg5[%c0_3, %c0_4] : memref<16x16xf32, #tpu.memory_space<vmem>>, vector<16x16xf32>
    %c0_5 = arith.constant 0 : index
    %c0_6 = arith.constant 0 : index
    %8 = vector.load %arg6[%c0_5, %c0_6] : memref<128x128xf32, #tpu.memory_space<vmem>>, vector<128x128xf32>
    %cst_7 = arith.constant dense<0.000000e+00> : vector<16x128xf32>
    %9 = tpu.matmul %6, %8, %cst_7 {dimension_numbers = #tpu.dot_dimension_numbers<[1], [0], [0], [1], [0, 0, 1, 1], [], []>} : vector<16x128xf32>, vector<128x128xf32>, vector<16x128xf32> -> vector<16x128xf32>
    %cst_8 = arith.constant dense<0.000000e+00> : vector<16x128xf32>
    %10 = tpu.matmul %7, %9, %cst_8 {dimension_numbers = #tpu.dot_dimension_numbers<[1], [0], [0], [1], [0, 0, 1, 1], [], []>} : vector<16x16xf32>, vector<16x128xf32>, vector<16x128xf32> -> vector<16x128xf32>
    %c0_9 = arith.constant 0 : index
    %c0_10 = arith.constant 0 : index
    %c0_11 = arith.constant 0 : index
    %11 = vector.load %arg3[%c0_9, %c0_10, %c0_11] : memref<1x13x136xf32, #tpu.memory_space<vmem>>, vector<1x13x136xf32>
    %12 = vector.shape_cast %11 : vector<1x13x136xf32> to vector<13x136xf32>
    %c0_12 = arith.constant 0 : index
    %c0_13 = arith.constant 0 : index
    %13 = vector.load %arg7[%c0_12, %c0_13] : memref<16x13xf32, #tpu.memory_space<vmem>>, vector<16x13xf32>
    %c0_14 = arith.constant 0 : index
    %c0_15 = arith.constant 0 : index
    %14 = vector.load %arg8[%c0_14, %c0_15] : memref<136x128xf32, #tpu.memory_space<vmem>>, vector<136x128xf32>
    %cst_16 = arith.constant dense<0.000000e+00> : vector<13x128xf32>
    %15 = tpu.matmul %12, %14, %cst_16 {dimension_numbers = #tpu.dot_dimension_numbers<[1], [0], [0], [1], [0, 0, 1, 1], [], []>} : vector<13x136xf32>, vector<136x128xf32>, vector<13x128xf32> -> vector<13x128xf32>
    %cst_17 = arith.constant dense<0.000000e+00> : vector<16x128xf32>
    %16 = tpu.matmul %13, %15, %cst_17 {dimension_numbers = #tpu.dot_dimension_numbers<[1], [0], [0], [1], [0, 0, 1, 1], [], []>} : vector<16x13xf32>, vector<13x128xf32>, vector<16x128xf32> -> vector<16x128xf32>
    %c0_18 = arith.constant 0 : index
    %c0_19 = arith.constant 0 : index
    %c0_20 = arith.constant 0 : index
    %17 = vector.load %arg4[%c0_18, %c0_19, %c0_20] : memref<1x12x160xf32, #tpu.memory_space<vmem>>, vector<1x12x160xf32>
    %18 = vector.shape_cast %17 : vector<1x12x160xf32> to vector<12x160xf32>
    %cst_21 = arith.constant 1.000000e+00 : f32
    %19 = vector.broadcast %cst_21 : f32 to vector<12x160xf32>
    %20 = arith.divf %19, %18 : vector<12x160xf32>
    %c0_22 = arith.constant 0 : index
    %c0_23 = arith.constant 0 : index
    %21 = vector.load %arg9[%c0_22, %c0_23] : memref<16x12xf32, #tpu.memory_space<vmem>>, vector<16x12xf32>
    %c0_24 = arith.constant 0 : index
    %c0_25 = arith.constant 0 : index
    %22 = vector.load %arg10[%c0_24, %c0_25] : memref<160x128xf32, #tpu.memory_space<vmem>>, vector<160x128xf32>
    %cst_26 = arith.constant dense<0.000000e+00> : vector<12x128xf32>
    %23 = tpu.matmul %20, %22, %cst_26 {dimension_numbers = #tpu.dot_dimension_numbers<[1], [0], [0], [1], [0, 0, 1, 1], [], []>} : vector<12x160xf32>, vector<160x128xf32>, vector<12x128xf32> -> vector<12x128xf32>
    %cst_27 = arith.constant dense<0.000000e+00> : vector<16x128xf32>
    %24 = tpu.matmul %21, %23, %cst_27 {dimension_numbers = #tpu.dot_dimension_numbers<[1], [0], [0], [1], [0, 0, 1, 1], [], []>} : vector<16x12xf32>, vector<12x128xf32>, vector<16x128xf32> -> vector<16x128xf32>
    %25 = vector.broadcast %0 : f32 to vector<16x128xf32>
    %26 = arith.mulf %25, %10 : vector<16x128xf32>
    %27 = vector.broadcast %1 : f32 to vector<16x128xf32>
    %28 = arith.mulf %27, %16 : vector<16x128xf32>
    %29 = arith.addf %26, %28 : vector<16x128xf32>
    %30 = vector.broadcast %2 : f32 to vector<16x128xf32>
    %31 = arith.mulf %30, %24 : vector<16x128xf32>
    %32 = arith.addf %29, %31 : vector<16x128xf32>
    %c0_28 = arith.constant 0 : index
    %c0_29 = arith.constant 0 : index
    %c0_30 = arith.constant 0 : index
    %33 = vector.load %arg11[%c0_28, %c0_29, %c0_30] : memref<1x16x128xf32, #tpu.memory_space<vmem>>, vector<1x16x128xf32>
    %34 = vector.shape_cast %33 : vector<1x16x128xf32> to vector<16x128xf32>
    %35 = vector.shape_cast %32 : vector<16x128xf32> to vector<1x16x128xf32>
    tpu.vector_store %arg11[%c0_28, %c0_29, %c0_30], %35 {strides = array<i32>} : memref<1x16x128xf32, #tpu.memory_space<vmem>>, vector<1x16x128xf32>,
    %c0_31 = arith.constant 0 : index
    %c0_32 = arith.constant 0 : index
    %c0_33 = arith.constant 0 : index
    %36 = vector.load %arg12[%c0_31, %c0_32, %c0_33] : memref<1x16x128xf32, #tpu.memory_space<vmem>>, vector<1x16x128xf32>
    %37 = vector.shape_cast %36 : vector<1x16x128xf32> to vector<16x128xf32>
    %38 = vector.shape_cast %10 : vector<16x128xf32> to vector<1x16x128xf32>
    tpu.vector_store %arg12[%c0_31, %c0_32, %c0_33], %38 {strides = array<i32>} : memref<1x16x128xf32, #tpu.memory_space<vmem>>, vector<1x16x128xf32>,
    %c0_34 = arith.constant 0 : index
    %c0_35 = arith.constant 0 : index
    %c0_36 = arith.constant 0 : index
    %39 = vector.load %arg13[%c0_34, %c0_35, %c0_36] : memref<1x16x128xf32, #tpu.memory_space<vmem>>, vector<1x16x128xf32>
    %40 = vector.shape_cast %39 : vector<1x16x128xf32> to vector<16x128xf32>
    %41 = vector.shape_cast %16 : vector<16x128xf32> to vector<1x16x128xf32>
    tpu.vector_store %arg13[%c0_34, %c0_35, %c0_36], %41 {strides = array<i32>} : memref<1x16x128xf32, #tpu.memory_space<vmem>>, vector<1x16x128xf32>,
    %c0_37 = arith.constant 0 : index
    %c0_38 = arith.constant 0 : index
    %c0_39 = arith.constant 0 : index
    %42 = vector.load %arg14[%c0_37, %c0_38, %c0_39] : memref<1x16x128xf32, #tpu.memory_space<vmem>>, vector<1x16x128xf32>
    %43 = vector.shape_cast %42 : vector<1x16x128xf32> to vector<16x128xf32>
    %44 = vector.shape_cast %24 : vector<16x128xf32> to vector<1x16x128xf32>
    tpu.vector_store %arg14[%c0_37, %c0_38, %c0_39], %44 {strides = array<i32>} : memref<1x16x128xf32, #tpu.memory_space<vmem>>, vector<1x16x128xf32>,
    return
  }
  func.func @transform_0(%arg0: i32) -> i32 {
    %c0_i32 = arith.constant 0 : i32
    %c0_i32_0 = arith.constant 0 : i32
    return %c0_i32 : i32
  }
  func.func @transform_1(%arg0: i32) -> (i32, i32, i32) {
    %c0_i32 = arith.constant 0 : i32
    %c0_i32_0 = arith.constant 0 : i32
    %c0_i32_1 = arith.constant 0 : i32
    return %arg0, %c0_i32, %c0_i32_0 : i32, i32, i32
  }
  func.func @transform_2(%arg0: i32) -> (i32, i32, i32) {
    %c0_i32 = arith.constant 0 : i32
    %c0_i32_0 = arith.constant 0 : i32
    %c0_i32_1 = arith.constant 0 : i32
    return %arg0, %c0_i32, %c0_i32_0 : i32, i32, i32
  }
  func.func @transform_3(%arg0: i32) -> (i32, i32, i32) {
    %c0_i32 = arith.constant 0 : i32
    %c0_i32_0 = arith.constant 0 : i32
    %c0_i32_1 = arith.constant 0 : i32
    return %arg0, %c0_i32, %c0_i32_0 : i32, i32, i32
  }
  func.func @transform_4(%arg0: i32) -> (i32, i32) {
    %c0_i32 = arith.constant 0 : i32
    %c0_i32_0 = arith.constant 0 : i32
    %c0_i32_1 = arith.constant 0 : i32
    return %c0_i32, %c0_i32_0 : i32, i32
  }
  func.func @transform_5(%arg0: i32) -> (i32, i32) {
    %c0_i32 = arith.constant 0 : i32
    %c0_i32_0 = arith.constant 0 : i32
    %c0_i32_1 = arith.constant 0 : i32
    return %c0_i32, %c0_i32_0 : i32, i32
  }
  func.func @transform_6(%arg0: i32) -> (i32, i32) {
    %c0_i32 = arith.constant 0 : i32
    %c0_i32_0 = arith.constant 0 : i32
    %c0_i32_1 = arith.constant 0 : i32
    return %c0_i32, %c0_i32_0 : i32, i32
  }
  func.func @transform_7(%arg0: i32) -> (i32, i32) {
    %c0_i32 = arith.constant 0 : i32
    %c0_i32_0 = arith.constant 0 : i32
    %c0_i32_1 = arith.constant 0 : i32
    return %c0_i32, %c0_i32_0 : i32, i32
  }
  func.func @transform_8(%arg0: i32) -> (i32, i32) {
    %c0_i32 = arith.constant 0 : i32
    %c0_i32_0 = arith.constant 0 : i32
    %c0_i32_1 = arith.constant 0 : i32
    return %c0_i32, %c0_i32_0 : i32, i32
  }
  func.func @transform_9(%arg0: i32) -> (i32, i32) {
    %c0_i32 = arith.constant 0 : i32
    %c0_i32_0 = arith.constant 0 : i32
    %c0_i32_1 = arith.constant 0 : i32
    return %c0_i32, %c0_i32_0 : i32, i32
  }
  func.func @transform_10(%arg0: i32) -> (i32, i32, i32) {
    %c0_i32 = arith.constant 0 : i32
    %c0_i32_0 = arith.constant 0 : i32
    %c0_i32_1 = arith.constant 0 : i32
    return %arg0, %c0_i32, %c0_i32_0 : i32, i32, i32
  }
  func.func @transform_11(%arg0: i32) -> (i32, i32, i32) {
    %c0_i32 = arith.constant 0 : i32
    %c0_i32_0 = arith.constant 0 : i32
    %c0_i32_1 = arith.constant 0 : i32
    return %arg0, %c0_i32, %c0_i32_0 : i32, i32, i32
  }
  func.func @transform_12(%arg0: i32) -> (i32, i32, i32) {
    %c0_i32 = arith.constant 0 : i32
    %c0_i32_0 = arith.constant 0 : i32
    %c0_i32_1 = arith.constant 0 : i32
    return %arg0, %c0_i32, %c0_i32_0 : i32, i32, i32
  }
  func.func @transform_13(%arg0: i32) -> (i32, i32, i32) {
    %c0_i32 = arith.constant 0 : i32
    %c0_i32_0 = arith.constant 0 : i32
    %c0_i32_1 = arith.constant 0 : i32
    return %arg0, %c0_i32, %c0_i32_0 : i32, i32, i32
  }
}

</mosaic_0001>

<bundles_post_ra>
// kernel: tpu_custom_call.1
= control target key start
LH: loop header
LB: loop body
LE: loop exit
PB: predicated region body
PF: predicated region fallthrough
CT: control target
= control target key end

     0   :  { %19 = vsyncpa [#allocation5], 0  ;;  %s1629_s0 = inlined_call_operand.vmem [shape: f32[3], index: 0, kind: input, shape index: {}]   ;;  %s1630_s1 = inlined_call_operand.hbm [shape: f32[1,16,128], index: 1, kind: input, shape index: {}]   ;;  %s1631_s2 = inlined_call_operand.vmem [shape: f32[1,13,136], index: 2, kind: input, shape index: {}]   ;;  %s1632_s3 = inlined_call_operand.vmem [shape: f32[1,12,160], index: 3, kind: input, shape index: {}]   ;;  %s1633_s4 = inlined_call_operand.hbm [shape: f32[16,16], index: 4, kind: input, shape index: {}]   ;;  %s1634_s5 = inlined_call_operand.hbm [shape: f32[128,128], index: 5, kind: input, shape index: {}]   ;;  %s1635_s6 = inlined_call_operand.hbm [shape: f32[16,13], index: 6, kind: input, shape index: {}]   ;;  %s1636_s7 = inlined_call_operand.vmem [shape: f32[136,128], index: 7, kind: input, shape index: {}]   ;;  %s1637_s8 = inlined_call_operand.hbm [shape: f32[16,12], index: 8, kind: input, shape index: {}]   ;;  %s1638_s9 = inlined_call_operand.hbm [shape: f32[160,128], index: 9, kind: input, shape index: {}]   ;;  %s1639_s10 = inlined_call_operand.hbm [shape: f32[1,16,128], index: 10, kind: output, shape index: {0}]   ;;  %s1640_s11 = inlined_call_operand.hbm [shape: f32[1,16,128], index: 11, kind: output, shape index: {1}]   ;;  %s1641_s12 = inlined_call_operand.hbm [shape: f32[1,16,128], index: 12, kind: output, shape index: {2}]   ;;  %s1642_s13 = inlined_call_operand.hbm [shape: f32[1,16,128], index: 13, kind: output, shape index: {3}]  }
   0x1   :  { %20 = vsyncpa [#allocation3], 0 }
   0x2   :  { %21 = vsyncpa [#allocation8], 0 }
   0x3   :  { %22 = vsyncpa [#allocation11], 0 }
   0x4   :  { %23 = vsyncpa [#allocation14], 0 }
   0x5   :  { %24 = vsyncpa [#allocation4], 0 }
   0x6   :  { %25 = vsyncpa [#allocation17], 0 }
   0x7   :  { %26 = vsyncpa [#allocation20], 0  ;;  %s1281_s25 = smov [#allocation7]   ;;  %s1282_s27 = smov [#allocation10]  }
   0x8   :  { %s58_s26 = sshll.u32 %s1281_s25, 4  ;;  %s82_s28 = sshll.u32 %s1282_s27, 4  ;;  %s59_s26 = int_to_ptr.vmem [resolvable:$true] %s58_s26  ;;  %s1367_s28 = int_to_ptr.vmem [resolvable:$true] %s82_s28 }
   0x9   :  { %s1033_s14 = scalar_lea.hbm %s1633_s4, 256 }
   0xa   :  { %p1034_p0 = scmp.ne.s32.totalorder %s1633_s4, %s1033_s14  ;;  %p1037_p1 = scmp.lt.u32.totalorder %s1033_s14, %s1633_s4 }
   0xc   :  { %p1039_p2 = pnand %p1037_p1, %p1034_p0 }
   0xe   :  { %1042 = shalt.err (!%p1039_p2)
}
   0xf   :  { %s1043_s19 = scalar_lea.vmem %s59_s26, 256  ;;  %p1048_p4 = scmp.lt.s32.totalorder %s59_s26, %s59_s26 }
  0x10   :  { %p1044_p3 = scmp.ne.s32.totalorder %s59_s26, %s1043_s19  ;;  %p1049_p5 = scmp.lt.s32.totalorder %s1043_s19, %s1043_s19 }
  0x12   :  { %p1050_p6 = por %p1049_p5, %p1048_p4 }
  0x14   :  { %p1051_p7 = pnand %p1050_p6, %p1044_p3 }
  0x16   :  { %1054 = shalt.err (!%p1051_p7)
}
  0x17   :  { %s1283_s20 = smov 128   ;;  %s1284_s21 = smov 8  }
  0x18   :  { %64 = dma.hbm_to_vmem [thread:$0]  %s1633_s4, 256, %s59_s26, [#allocation8], %s1283_s20, %s1283_s20, %s1284_s21  }
  0x19   :  { %s1055_s27 = scalar_lea.hbm %s1635_s6, 256 }
  0x1a   :  { %p1056_p8 = scmp.ne.s32.totalorder %s1635_s6, %s1055_s27  ;;  %p1059_p9 = scmp.lt.u32.totalorder %s1055_s27, %s1635_s6 }
  0x1c   :  { %p1061_p10 = pnand %p1059_p9, %p1056_p8 }
  0x1e   :  { %1064 = shalt.err (!%p1061_p10)
}
  0x1f   :  { %s1065_s16 = scalar_lea.vmem %s1367_s28, 256  ;;  %p1070_p12 = scmp.lt.s32.totalorder %s1367_s28, %s1367_s28 }
  0x20   :  { %p1066_p11 = scmp.ne.s32.totalorder %s1367_s28, %s1065_s16  ;;  %p1071_p13 = scmp.lt.s32.totalorder %s1065_s16, %s1065_s16 }
  0x22   :  { %p1072_p0 = por %p1071_p13, %p1070_p12 }
  0x24   :  { %p1073_p1 = pnand %p1072_p0, %p1066_p11 }
  0x26   :  { %1076 = shalt.err (!%p1073_p1)
}
  0x27   :  { %88 = dma.hbm_to_vmem [thread:$0]  %s1635_s6, 256, %s1367_s28, [#allocation11], %s1283_s20, %s1283_s20, %s1284_s21  }
  0x28   :  { %s33_s19 = sshll.u32 %s1629_s0, 4  ;;  %s34_s19 = int_to_ptr.vmem [resolvable:$true] %s33_s19 }
  0x29   :  { %s1077_s22 = scalar_lea.vmem %s34_s19, 16  ;;  %p1082_p3 = scmp.lt.s32.totalorder %s34_s19, %s34_s19 }
  0x2a   :  { %p1078_p2 = scmp.ne.s32.totalorder %s34_s19, %s1077_s22  ;;  %p1083_p4 = scmp.lt.s32.totalorder %s1077_s22, %s1077_s22 }
  0x2c   :  { %p1084_p5 = por %p1083_p4, %p1082_p3 }
  0x2e   :  { %p1085_p6 = pnand %p1084_p5, %p1078_p2 }
  0x30   :  { %1088 = shalt.err (!%p1085_p6)
}
  0x31   :  { %s1285_s23 = smov [#allocation2]   ;;  %s1286_s24 = smov [#allocation6]  }
  0x32   :  { %36 = dma.vmem_to_smem %s34_s19, 16, %s1285_s23, [#allocation5]  }
  0x33   :  { %s42_s25 = sshll.u32 %s1286_s24, 4  ;;  %s1287_s27 = smov [#allocation9]   ;;  %s43_s25 = int_to_ptr.vmem [resolvable:$true] %s42_s25 }
  0x34   :  { %s70_s29 = sshll.u32 %s1287_s27, 4  ;;  %s1089_s30 = scalar_lea.hbm %s1630_s1, 256  ;;  %s71_s29 = int_to_ptr.vmem [resolvable:$true] %s70_s29 }
  0x35   :  { %p1090_p7 = scmp.ne.s32.totalorder %s1630_s1, %s1089_s30  ;;  %p1093_p8 = scmp.lt.u32.totalorder %s1089_s30, %s1630_s1 }
  0x37   :  { %p1095_p9 = pnand %p1093_p8, %p1090_p7 }
  0x39   :  { %1098 = shalt.err (!%p1095_p9)
}
  0x3a   :  { %s1099_s4 = scalar_lea.vmem %s43_s25, 256  ;;  %p1104_p11 = scmp.lt.s32.totalorder %s43_s25, %s43_s25 }
  0x3b   :  { %p1100_p10 = scmp.ne.s32.totalorder %s43_s25, %s1099_s4  ;;  %p1105_p12 = scmp.lt.s32.totalorder %s1099_s4, %s1099_s4 }
  0x3d   :  { %p1106_p13 = por %p1105_p12, %p1104_p11 }
  0x3f   :  { %p1107_p0 = pnand %p1106_p13, %p1100_p10 }
  0x41   :  { %1110 = shalt.err (!%p1107_p0)
}
  0x42   :  { %48 = dma.hbm_to_vmem [thread:$0]  %s1630_s1, 256, %s43_s25, [#allocation3], %s1283_s20, %s1283_s20, %s1284_s21  }
  0x43   :  { %s1111_s22 = scalar_lea.hbm %s1634_s5, 2048 }
  0x44   :  { %p1112_p1 = scmp.ne.s32.totalorder %s1634_s5, %s1111_s22  ;;  %p1115_p2 = scmp.lt.u32.totalorder %s1111_s22, %s1634_s5 }
  0x46   :  { %p1117_p3 = pnand %p1115_p2, %p1112_p1 }
  0x48   :  { %1120 = shalt.err (!%p1117_p3)
}
  0x49   :  { %s1121_s28 = scalar_lea.vmem %s71_s29, 2048  ;;  %p1126_p5 = scmp.lt.s32.totalorder %s71_s29, %s71_s29 }
  0x4a   :  { %p1122_p4 = scmp.ne.s32.totalorder %s71_s29, %s1121_s28  ;;  %p1127_p6 = scmp.lt.s32.totalorder %s1121_s28, %s1121_s28 }
  0x4c   :  { %p1128_p7 = por %p1127_p6, %p1126_p5 }
  0x4e   :  { %p1129_p8 = pnand %p1128_p7, %p1122_p4 }
  0x50   :  { %1132 = shalt.err (!%p1129_p8)
}
  0x51   :  { %76 = dma.hbm_to_vmem [thread:$0]  %s1634_s5, 2048, %s71_s29, [#allocation8], %s1283_s20, %s1283_s20, %s1284_s21  }
  0x52   :  { %s1288_s30 = smov [#allocation12]   ;;  %s1289_s14 = smov [#allocation13]  }
  0x53   :  { %s96_s0 = sshll.u32 %s1288_s30, 4  ;;  %s108_s15 = sshll.u32 %s1289_s14, 4  ;;  %s97_s0 = int_to_ptr.vmem [resolvable:$true] %s96_s0  ;;  %s109_s15 = int_to_ptr.vmem [resolvable:$true] %s108_s15 }
  0x54   :  { %s1133_s26 = scalar_lea.hbm %s1637_s8, 256 }
  0x55   :  { %p1134_p9 = scmp.ne.s32.totalorder %s1637_s8, %s1133_s26  ;;  %p1137_p10 = scmp.lt.u32.totalorder %s1133_s26, %s1637_s8 }
  0x57   :  { %p1139_p11 = pnand %p1137_p10, %p1134_p9 }
  0x59   :  { %1142 = shalt.err (!%p1139_p11)
}
  0x5a   :  { %s1143_s5 = scalar_lea.vmem %s97_s0, 256  ;;  %p1148_p13 = scmp.lt.s32.totalorder %s97_s0, %s97_s0 }
  0x5b   :  { %p1144_p12 = scmp.ne.s32.totalorder %s97_s0, %s1143_s5  ;;  %p1149_p0 = scmp.lt.s32.totalorder %s1143_s5, %s1143_s5 }
  0x5d   :  { %p1150_p1 = por %p1149_p0, %p1148_p13 }
  0x5f   :  { %p1151_p2 = pnand %p1150_p1, %p1144_p12 }
  0x61   :  { %1154 = shalt.err (!%p1151_p2)
}
  0x62   :  { %102 = dma.hbm_to_vmem [thread:$0]  %s1637_s8, 256, %s97_s0, [#allocation11], %s1283_s20, %s1283_s20, %s1284_s21  }
  0x63   :  { %s1155_s6 = scalar_lea.hbm %s1638_s9, 2560 }
  0x64   :  { %p1156_p3 = scmp.ne.s32.totalorder %s1638_s9, %s1155_s6  ;;  %p1159_p4 = scmp.lt.u32.totalorder %s1155_s6, %s1638_s9 }
  0x66   :  { %p1161_p5 = pnand %p1159_p4, %p1156_p3 }
  0x68   :  { %1164 = shalt.err (!%p1161_p5)
}
  0x69   :  { %s1165_s14 = scalar_lea.vmem %s109_s15, 2560  ;;  %p1170_p7 = scmp.lt.s32.totalorder %s109_s15, %s109_s15 }
  0x6a   :  { %p1166_p6 = scmp.ne.s32.totalorder %s109_s15, %s1165_s14  ;;  %p1171_p8 = scmp.lt.s32.totalorder %s1165_s14, %s1165_s14 }
  0x6c   :  { %p1172_p9 = por %p1171_p8, %p1170_p7 }
  0x6e   :  { %p1173_p10 = pnand %p1172_p9, %p1166_p6 }
  0x70   :  { %1176 = shalt.err (!%p1173_p10)
}
  0x71   :  { %114 = dma.hbm_to_vmem [thread:$0]  %s1638_s9, 2560, %s109_s15, [#allocation14], %s1283_s20, %s1283_s20, %s1284_s21  }
  0x72   :  { %1265 = dma.done.wait [#allocation5], 16  }
  0x73   :  { %1266 = vsyncadd [#allocation5], 4294967280 }
  0x74   :  { %1267 = dma.done.wait [#allocation3], 256  }
  0x75   :  { %1268 = vsyncadd [#allocation3], 4294967040 }
  0x76   :  { %1269 = dma.done.wait [#allocation8], 2304  }
  0x77   :  { %1270 = vsyncadd [#allocation8], 4294964992 }
  0x78   :  { %1271 = dma.done.wait [#allocation11], 512  }
  0x79   :  { %1272 = vsyncadd [#allocation11], 4294966784 }
  0x7a   :  { %1273 = dma.done.wait [#allocation14], 2560  }
  0x7b   :  { %1274 = vsyncadd [#allocation14], 4294964736 }
  0x7c   :  { %136 = sfence }
  0x7d   :  { %v148_v0 = vld [vmem:[#allocation9] sm:$0xff]  ;;  %v149_v1 = vld [vmem:[#allocation9 + $0x8] sm:$0xff]  ;;  %v150_v2 = vld [vmem:[#allocation9 + $0x10] sm:$0xff]  ;;  %v1290_v31 = vmov 0.0|0.0   ;;  %vm239_vm0 = vcmask 130048   ;;  %vm546_vm1 = vcmask 261120  }
  0x7e   :  { %v903_v3 = vpack.c.bf16 %v149_v1, %v148_v0  ;;  %v151_v4 = vld [vmem:[#allocation9 + $0x18] sm:$0xff]  ;;  %v152_v6 = vld [vmem:[#allocation9 + $0x20] sm:$0xff]  ;;  %v153_v7 = vld [vmem:[#allocation9 + $0x28] sm:$0xff]  ;;  %vm344_vm2 = vcmask 64512   ;;  %vm426_vm3 = vcmask 105472   ;;  %vm433_vm4 = vcmask 1044480  }
  0x7f   :  { %v907_v5 = vpack.c.bf16 %v151_v4, %v150_v2  ;;  %v911_v8 = vpack.c.bf16 %v153_v7, %v152_v6  ;;  %v140_v9 = vld [vmem:[#allocation6] sm:$0xff]  ;;  %v154_v10 = vld [vmem:[#allocation9 + $0x30] sm:$0xff]  ;;  %v155_v11 = vld [vmem:[#allocation9 + $0x38] sm:$0xff]  ;;  %vm635_vm5 = vcmask 1043456   ;;  %vm1292_vm6 = vmmov 1  }
  0x80   :  { %904 = vmatprep.subr.bf16.mxu0 %v903_v3  ;;  %1021 = vrcp.f32 %v140_v9  ;;  %v915_v12 = vpack.c.bf16 %v155_v11, %v154_v10  ;;  %v156_v13 = vld [vmem:[#allocation9 + $0x40] sm:$0xff]  ;;  %v157_v14 = vld [vmem:[#allocation9 + $0x48] sm:$0xff]  ;;  %v158_v16 = vld [vmem:[#allocation9 + $0x50] sm:$0xff]  ;;  %vm628_vm9 = vcmask 97280  }
  0x81   :  { %906 = vmatpush3.bf16.msra.mxu0 %v903_v3  ;;  %v919_v15 = vpack.c.bf16 %v157_v14, %v156_v13  ;;  %v159_v17 = vld [vmem:[#allocation9 + $0x58] sm:$0xff]  ;;  %v160_v20 = vld [vmem:[#allocation9 + $0x60] sm:$0xff]  ;;  %v161_v21 = vld [vmem:[#allocation9 + $0x68] sm:$0xff] }
  0x82   :  { %908 = vmatprep.subr.bf16.mxu0 %v907_v5  ;;  %v923_v19 = vpack.c.bf16 %v159_v17, %v158_v16  ;;  %v141_v22 = vld [vmem:[#allocation6 + $0x8] sm:$0xff]  ;;  %v927_v23 = vpack.c.bf16 %v161_v21, %v160_v20  ;;  %v162_v24 = vld [vmem:[#allocation9 + $0x70] sm:$0xff]  ;;  %v163_v25 = vld [vmem:[#allocation9 + $0x78] sm:$0xff] }
  0x83   :  { %1023 = vrcp.f32 %v141_v22  ;;  %v931_v26 = vpack.c.bf16 %v163_v25, %v162_v24  ;;  %v526_v28 = vld [vmem:[#allocation13] sm:$0xff]  ;;  %v527_v29 = vld [vmem:[#allocation13 + $0x8] sm:$0xff]  ;;  %v528_v32 = vld [vmem:[#allocation13 + $0x10] sm:$0xff] }
  0x84   :  { %v970_v30 = vpack.c.bf16 %v527_v29, %v526_v28  ;;  %v529_v33 = vld [vmem:[#allocation13 + $0x18] sm:$0xff]  ;;  %v146_v34 = vld [vmem:[#allocation7] sm:$0xff]  ;;  %v530_v36 = vld [vmem:[#allocation13 + $0x20] sm:$0xff] }
  0x85   :  { %910 = vmatpush3.bf16.msra.mxu0 %v907_v5  ;;  %v973_v35 = vpack.c.bf16 %v529_v33, %v528_v32  ;;  %886 = vmatprep.mubr.msk.f32.mxu1 %vm239_vm0, %v146_v34  ;;  %v531_v37 = vld [vmem:[#allocation13 + $0x28] sm:$0xff]  ;;  %v532_v39 = vld [vmem:[#allocation13 + $0x30] sm:$0xff]  ;;  %v533_v40 = vld [vmem:[#allocation13 + $0x38] sm:$0xff]  ;;  %v1291_v34 = vmov 0.0  }
  0x86   :  { %912 = vmatprep.subr.bf16.mxu0 %v911_v8  ;;  %v976_v38 = vpack.c.bf16 %v531_v37, %v530_v36  ;;  %v979_v41 = vpack.c.bf16 %v533_v40, %v532_v39  ;;  %v534_v42 = vld [vmem:[#allocation13 + $0x40] sm:$0xff]  ;;  %v535_v43 = vld [vmem:[#allocation13 + $0x48] sm:$0xff]  ;;  %v536_v45 = vld [vmem:[#allocation13 + $0x50] sm:$0xff] }
  0x87   :  { %v982_v44 = vpack.c.bf16 %v535_v43, %v534_v42  ;;  %v537_v46 = vld [vmem:[#allocation13 + $0x58] sm:$0xff]  ;;  %v538_v48 = vld [vmem:[#allocation13 + $0x60] sm:$0xff]  ;;  %v539_v49 = vld [vmem:[#allocation13 + $0x68] sm:$0xff] }
  0x88   :  { %v985_v47 = vpack.c.bf16 %v537_v46, %v536_v45  ;;  %v988_v50 = vpack.c.bf16 %v539_v49, %v538_v48  ;;  %v540_v51 = vld [vmem:[#allocation13 + $0x70] sm:$0xff]  ;;  %v541_v52 = vld [vmem:[#allocation13 + $0x78] sm:$0xff]  ;;  %v513_v54 = vld [vmem:[%s1632_s3 + $0x8] sm:$0xff] }
  0x89   :  { %914 = vmatpush3.bf16.msra.mxu0 %v911_v8  ;;  %v991_v53 = vpack.c.bf16 %v541_v52, %v540_v51  ;;  %1025 = vrcp.f32 %v513_v54  ;;  %v512_v55 = vld [vmem:[%s1632_s3] sm:$0xff]  ;;  %v543_v57 = vld [vmem:[#allocation13 + $0x88] sm:$0xff]  ;;  %v515_v59 = vld [vmem:[%s1632_s3 + $0x18] sm:$0xf] }
  0x8a   :  { %916 = vmatprep.subr.bf16.mxu0 %v915_v12  ;;  %v1022_v18 = vpop.eup %1021  ;;  %1027 = vrcp.f32 %v512_v55  ;;  %v542_v56 = vld [vmem:[#allocation13 + $0x80] sm:$0xff]  ;;  %v514_v60 = vld [vmem:[%s1632_s3 + $0x10] sm:$0xf]  ;;  %v545_v62 = vld [vmem:[#allocation13 + $0x98] sm:$0xff] }
  0x8b   :  { %879 = vmatprep.mubr.f32.mxu0 %v1022_v18  ;;  %v994_v58 = vpack.c.bf16 %v543_v57, %v542_v56  ;;  %1029 = vrcp.f32 %v515_v59  ;;  %v544_v61 = vld [vmem:[#allocation13 + $0x90] sm:$0xff]  ;;  %v327_v7 = vld [vmem:[%s1636_s7] sm:$0xff]  ;;  %v328_v8 = vld [vmem:[%s1636_s7 + $0x8] sm:$0xff] }
  0x8c   :  { %1031 = vrcp.f32 %v514_v60  ;;  %v997_v63 = vpack.c.bf16 %v545_v62, %v544_v61  ;;  %v147_v9 = vld [vmem:[#allocation7 + $0x8] sm:$0xff]  ;;  %v940_v10 = vpack.c.bf16 %v328_v8, %v327_v7  ;;  %v329_v11 = vld [vmem:[%s1636_s7 + $0x10] sm:$0xff]  ;;  %v322_v13 = vld [vmem:[%s1631_s2 + $0x8] sm:$0xff] }
  0x8d   :  { %918 = vmatpush3.bf16.msra.mxu0 %v915_v12  ;;  %v1024_v27 = vpop.eup %1023  ;;  %v330_v12 = vld [vmem:[%s1636_s7 + $0x18] sm:$0xff]  ;;  %v332_v16 = vld [vmem:[%s1636_s7 + $0x28] sm:$0xff]  ;;  %v333_v18 = vld [vmem:[%s1636_s7 + $0x30] sm:$0xff] }
  0x8e   :  { %920 = vmatprep.subr.bf16.mxu0 %v919_v15  ;;  %v943_v14 = vpack.c.bf16 %v330_v12, %v329_v11  ;;  %v335_v21 = vld [vmem:[%s1636_s7 + $0x40] sm:$0xff]  ;;  %v336_v22 = vld [vmem:[%s1636_s7 + $0x48] sm:$0xff]  ;;  %v337_v24 = vld [vmem:[%s1636_s7 + $0x50] sm:$0xff] }
  0x8f   :  { %v338_v25 = vld [vmem:[%s1636_s7 + $0x58] sm:$0xff]  ;;  %v340_v28 = vld [vmem:[%s1636_s7 + $0x68] sm:$0xff]  ;;  %v321_v36 = vld [vmem:[%s1631_s2] sm:$0xff] }
  0x90   :  { %v342_v32 = vld [vmem:[%s1636_s7 + $0x78] sm:$0xff]  ;;  %v325_v43 = vld [vmem:[#allocation10] sm:$0xff]  ;;  %vm964_vm7 = vmpackc.low %vm433_vm4, %vm1292_vm6 }
  0x91   :  { %922 = vmatpush3.bf16.msra.mxu0 %v919_v15  ;;  %v331_v15 = vld [vmem:[%s1636_s7 + $0x20] sm:$0xff]  ;;  %v324_v37 = vld [vmem:[%s1631_s2 + $0x18] sm:$0x1f]  ;;  %vm1000_vm8 = vmpackc.low %vm635_vm5, %vm1292_vm6 }
  0x92   :  { %924 = vmatprep.subr.bf16.mxu0 %v923_v19  ;;  %v946_v17 = vpack.c.bf16 %v332_v16, %v331_v15  ;;  %v326_v51 = vld [vmem:[#allocation10 + $0x8] sm:$0xff]  ;;  %v524_v52 = vld [vmem:[#allocation12] sm:$0xff] }
  0x93   :  { %v1026_v0 = vpop.eup %1025 }
  0x94   :  { %v1028_v1 = vpop.eup %1027 }
  0x95   :  { %926 = vmatpush3.bf16.msra.mxu0 %v923_v19  ;;  %v1030_v2 = vpop.eup %1029  ;;  %v334_v19 = vld [vmem:[%s1636_s7 + $0x38] sm:$0xff] }
  0x96   :  { %928 = vmatprep.subr.bf16.mxu0 %v927_v23  ;;  %v1032_v3 = vpop.eup %1031  ;;  %v949_v20 = vpack.c.bf16 %v334_v19, %v333_v18 }
  0x99   :  { %930 = vmatpush3.bf16.msra.mxu0 %v927_v23  ;;  %v952_v23 = vpack.c.bf16 %v336_v22, %v335_v21 }
  0x9a   :  { %932 = vmatprep.subr.bf16.mxu0 %v931_v26 }
  0x9d   :  { %934 = vmatpush3.bf16.msra.mxu0 %v931_v26  ;;  %v955_v26 = vpack.c.bf16 %v338_v25, %v337_v24 }
  0x9e   :  { %969 = vmatprep.subr.bf16.mxu0 %v1290_v31 }
  0xa0   :  { %880 = vmatmul.mubr.f32.vlgmr.msra.gmra.mrb[0].mxu0 %v1024_v27  ;;  %v339_v27 = vld [vmem:[%s1636_s7 + $0x60] sm:$0xff] }
  0xa1   :  { %971 = vmatpush1.bf16.msra.mxu0 %v970_v30  ;;  %812 = vmatprep.mubr.msk.f32.mxu0 %vm546_vm1, %v1026_v0  ;;  %v958_v29 = vpack.c.bf16 %v340_v28, %v339_v27  ;;  %v341_v30 = vld [vmem:[%s1636_s7 + $0x70] sm:$0xff] }
  0xa2   :  { %972 = vmatprep.subr.bf16.mxu0 %v1290_v31  ;;  %v961_v33 = vpack.c.bf16 %v342_v32, %v341_v30 }
  0xa5   :  { %974 = vmatpush1.bf16.msra.mxu0 %v973_v35  ;;  %v343_v35 = vld [vmem:[%s1636_s7 + $0x80] sm:$0xff] }
  0xa6   :  { %975 = vmatprep.subr.bf16.mxu0 %v1290_v31 }
  0xa9   :  { %977 = vmatpush1.bf16.msra.mxu0 %v976_v38 }
  0xaa   :  { %978 = vmatprep.subr.bf16.mxu0 %v1290_v31 }
  0xad   :  { %980 = vmatpush1.bf16.msra.mxu0 %v979_v41 }
  0xae   :  { %981 = vmatprep.subr.bf16.mxu0 %v1290_v31 }
  0xb1   :  { %983 = vmatpush1.bf16.msra.mxu0 %v982_v44 }
  0xb2   :  { %984 = vmatprep.subr.bf16.mxu0 %v1290_v31 }
  0xb5   :  { %986 = vmatpush1.bf16.msra.mxu0 %v985_v47 }
  0xb6   :  { %987 = vmatprep.subr.bf16.mxu0 %v1290_v31 }
  0xb9   :  { %989 = vmatpush1.bf16.msra.mxu0 %v988_v50 }
  0xba   :  { %990 = vmatprep.subr.bf16.mxu0 %v1290_v31 }
  0xbd   :  { %992 = vmatpush1.bf16.msra.mxu0 %v991_v53  ;;  %v525_v53 = vld [vmem:[#allocation12 + $0x8] sm:$0xff] }
  0xbe   :  { %993 = vmatprep.subr.bf16.mxu0 %v1290_v31 }
  0xc1   :  { %995 = vmatpush1.bf16.msra.mxu0 %v994_v58 }
  0xc2   :  { %996 = vmatprep.subr.bf16.mxu0 %v1290_v31 }
  0xc5   :  { %998 = vmatpush1.bf16.msra.mxu0 %v997_v63 }
  0xc8   :  { %618 = vmatmul.mubr.f32.vlgmr.msra.gmra.mrb[2].mxu0 %v1028_v1 }
  0xc9   :  { %813 = vmatprep.mubr.msk.f32.mxu0 %vm546_vm1, %v1030_v2 }
  0xcc   :  { %623 = vmatmul.mubr.f32.gmra.mrb[4].mxu0 %v1032_v3 }
 0x173   :  { %v881_v4 = vpop.f32.mrb[0].mxu0 }
 0x174   :  { %v230_v5 = vpop.f32.mrb[1].mxu0 }
 0x175   :  { %v935_v6 = vpack.c.bf16 %v881_v4, %v230_v5 }
 0x177   :  { %936 = vmatprep.subr.bf16.mxu1 %v935_v6 }
 0x178   :  { %938 = vmatpush3.bf16.msra.mxu1 %v935_v6 }
 0x179   :  { %939 = vmatprep.subr.bf16.mxu1 %v1290_v31 }
 0x17b   :  { %887 = vmatmul.mubr.msk.f32.vlgmr.msra.gmra.mrb[0].mxu1 %vm239_vm0, %v147_v9 }
 0x17c   :  { %941 = vmatpush1.bf16.msra.mxu1 %v940_v10  ;;  %807 = vmatprep.mubr.msk.f32.mxu1 %vm344_vm2, %v322_v13 }
 0x17d   :  { %942 = vmatprep.subr.bf16.mxu1 %v1290_v31 }
 0x180   :  { %944 = vmatpush1.bf16.msra.mxu1 %v943_v14 }
 0x181   :  { %945 = vmatprep.subr.bf16.mxu1 %v1290_v31 }
 0x184   :  { %947 = vmatpush1.bf16.msra.mxu1 %v946_v17 }
 0x185   :  { %948 = vmatprep.subr.bf16.mxu1 %v1290_v31 }
 0x188   :  { %950 = vmatpush1.bf16.msra.mxu1 %v949_v20 }
 0x189   :  { %951 = vmatprep.subr.bf16.mxu1 %v1290_v31 }
 0x18c   :  { %953 = vmatpush1.bf16.msra.mxu1 %v952_v23 }
 0x18d   :  { %954 = vmatprep.subr.bf16.mxu1 %v1290_v31 }
 0x190   :  { %956 = vmatpush1.bf16.msra.mxu1 %v955_v26 }
 0x191   :  { %957 = vmatprep.subr.bf16.mxu1 %v1290_v31 }
 0x194   :  { %959 = vmatpush1.bf16.msra.mxu1 %v958_v29 }
 0x195   :  { %960 = vmatprep.subr.bf16.mxu1 %v1290_v31  ;;  %v323_v31 = vld [vmem:[%s1631_s2 + $0x10] sm:$0x1f]  ;;  %s1293_s2 = smov [#allocation16]  }
 0x196   :  { %s752_s7 = sshll.u32 %s1293_s2, 4  ;;  %s753_s7 = int_to_ptr.vmem [resolvable:$true] %s752_s7 }
 0x197   :  { %s1177_s26 = scalar_lea.vmem %s753_s7, 256  ;;  %p1182_p12 = scmp.lt.s32.totalorder %s753_s7, %s753_s7 }
 0x198   :  { %962 = vmatpush1.bf16.msra.mxu1 %v961_v33  ;;  %p1178_p11 = scmp.ne.s32.totalorder %s753_s7, %s1177_s26  ;;  %p1183_p13 = scmp.lt.s32.totalorder %s1177_s26, %s1177_s26 }
 0x199   :  { %383 = vmatprep.subr.mxu1 %v1291_v34 }
 0x19a   :  { %p1184_p0 = por %p1183_p13, %p1182_p12 }
 0x19b   :  { %v619_v38 = vpop.f32.mrb[2].mxu0 }
 0x19c   :  { %384 = vmatpush1.msra.mxu1 %v343_v35  ;;  %v621_v39 = vpop.f32.mrb[3].mxu0  ;;  %p1185_p1 = pnand %p1184_p0, %p1178_p11 }
 0x19d   :  { %416 = vmatmul.mubr.f32.vlgmr.msra.gmra.mrb[2].mxu1 %v321_v36 }
 0x19e   :  { %808 = vmatprep.mubr.msk.f32.mxu1 %vm344_vm2, %v324_v37 }
 0x19f   :  { %v624_v40 = vpop.f32.mrb[4].mxu0 }
 0x1a0   :  { %v999_v41 = vpack.c.bf16 %v624_v40, %v619_v38  ;;  %v626_v42 = vpop.f32.mrb[5].mxu0 }
 0x1a1   :  { %421 = vmatmul.mubr.f32.gmra.mrb[4].mxu1 %v323_v31 }
 0x1a2   :  { %893 = vmatprep.mubr.msk.f32.mxu1 %vm426_vm3, %v325_v43 }
 0x24e   :  { %v888_v44 = vpop.f32.mrb[0].mxu1 }
 0x24f   :  { %730 = vst [vmem:[#allocation16 + $0x8] sm:$0xff] %v888_v44  ;;  %v312_v45 = vpop.f32.mrb[1].mxu1 }
 0x250   :  { %729 = vst [vmem:[#allocation16] sm:$0xff] %v312_v45 }
 0x270   :  { %v417_v46 = vpop.f32.mrb[2].mxu1 }
 0x271   :  { %v419_v47 = vpop.f32.mrb[3].mxu1 }
 0x274   :  { %v422_v48 = vpop.f32.mrb[4].mxu1 }
 0x275   :  { %v963_v49 = vpack.c.bf16 %v422_v48, %v417_v46  ;;  %v424_v50 = vpop.f32.mrb[5].mxu1 }
 0x277   :  { %965 = vmatprep.subr.msk.bf16.mxu1 %vm964_vm7, %v963_v49 }
 0x278   :  { %968 = vmatpush3.bf16.msk.msra.mxu1 %vm964_vm7, %v963_v49 }
 0x279   :  { %1001 = vmatprep.subr.msk.bf16.mxu1 %vm1000_vm8, %v999_v41 }
 0x27b   :  { %894 = vmatmul.mubr.msk.f32.vlgmr.msra.gmra.mrb[6].mxu1 %vm426_vm3, %v326_v51 }
 0x27c   :  { %1004 = vmatpush3.bf16.msk.msra.mxu1 %vm1000_vm8, %v999_v41  ;;  %900 = vmatprep.mubr.msk.f32.mxu1 %vm628_vm9, %v524_v52 }
 0x27f   :  { %901 = vmatmul.mubr.msk.f32.vlgmr.msra.gmra.mrb[8].mxu1 %vm628_vm9, %v525_v53 }
 0x280   :  { %1188 = shalt.err (!%p1185_p1)
}
 0x281   :  { %s1189_s19 = scalar_lea.hbm %s1640_s11, 256 }
 0x282   :  { %p1190_p2 = scmp.ne.s32.totalorder %s1640_s11, %s1189_s19  ;;  %p1193_p3 = scmp.lt.u32.totalorder %s1189_s19, %s1640_s11 }
 0x284   :  { %p1195_p4 = pnand %p1193_p3, %p1190_p2 }
 0x286   :  { %1198 = shalt.err (!%p1195_p4)
}
 0x287   :  { %758 = dma.vmem_to_hbm [thread:$0]  %s753_s7, 256, %s1640_s11, [#allocation17], %s1283_s20, %s1283_s20, %s1284_s21  }
 0x288   :  { %s137_s27 = sld [smem:[#allocation2]]  ;;  %s803_s6 = sld [smem:[#allocation2 + $0x1]] }
 0x289   :  { %s1581_s28 = sld [smem:[#allocation2 + $0x2]]  ;;  %s1294_s1 = smov [#allocation18]  }
 0x28a   :  { %s764_s25 = sshll.u32 %s1294_s1, 4  ;;  %s1295_s30 = smov [#allocation19]   ;;  %s765_s25 = int_to_ptr.vmem [resolvable:$true] %s764_s25 }
 0x28b   :  { %s776_s14 = sshll.u32 %s1295_s30, 4  ;;  %s1199_s11 = scalar_lea.vmem %s765_s25, 256  ;;  %s777_s14 = int_to_ptr.vmem [resolvable:$true] %s776_s14 }
 0x28c   :  { %p1200_p5 = scmp.ne.s32.totalorder %s765_s25, %s1199_s11  ;;  %p1204_p6 = scmp.lt.s32.totalorder %s765_s25, %s765_s25 }
 0x28d   :  { %p1205_p7 = scmp.lt.s32.totalorder %s1199_s11, %s1199_s11 }
 0x28e   :  { %v714_v54 = vstv %s137_s27  ;;  %v717_v55 = vstv %s803_s6 }
 0x28f   :  { %v716_v57 = vmul.f32 %v888_v44, %v714_v54  ;;  %v715_v60 = vmul.f32 %v714_v54, %v312_v45  ;;  %v722_v62 = vstv %s1581_s28  ;;  %p1206_p8 = por %p1205_p7, %p1204_p6 }
 0x291   :  { %p1207_p9 = pnand %p1206_p8, %p1200_p5 }
 0x34e   :  { %v895_v56 = vpop.f32.mrb[6].mxu1 }
 0x34f   :  { %v719_v58 = vmul.f32 %v895_v56, %v717_v55  ;;  %732 = vst [vmem:[#allocation18 + $0x8] sm:$0xff] %v895_v56  ;;  %v503_v59 = vpop.f32.mrb[7].mxu1 }
 0x350   :  { %v718_v61 = vmul.f32 %v717_v55, %v503_v59  ;;  %731 = vst [vmem:[#allocation18] sm:$0xff] %v503_v59 }
 0x351   :  { %v721_v63 = vadd.f32 %v719_v58, %v716_v57 }
 0x352   :  { %1210 = shalt.err (!%p1207_p9)
}
 0x353   :  { %s1211_s9 = scalar_lea.hbm %s1641_s12, 256 }
 0x354   :  { %p1212_p10 = scmp.ne.s32.totalorder %s1641_s12, %s1211_s9  ;;  %p1215_p11 = scmp.lt.u32.totalorder %s1211_s9, %s1641_s12 }
 0x356   :  { %p1217_p12 = pnand %p1215_p11, %p1212_p10 }
 0x358   :  { %1220 = shalt.err (!%p1217_p12)
}
 0x359   :  { %770 = dma.vmem_to_hbm [thread:$0]  %s765_s25, 256, %s1641_s12, [#allocation17], %s1283_s20, %s1283_s20, %s1284_s21   ;;  %v720_v0 = vadd.f32 %v718_v61, %v715_v60  ;;  %v902_v1 = vpop.f32.mrb[8].mxu1 }
 0x35a   :  { %734 = vst [vmem:[#allocation19 + $0x8] sm:$0xff] %v902_v1  ;;  %v705_v2 = vpop.f32.mrb[9].mxu1  ;;  %v724_v3 = vmul.f32 %v902_v1, %v722_v62  ;;  %s1296_s17 = smov [#allocation15]   ;;  %s1221_s19 = scalar_lea.vmem %s777_s14, 256 }
 0x35b   :  { %s740_s18 = sshll.u32 %s1296_s17, 4  ;;  %v723_v4 = vmul.f32 %v722_v62, %v705_v2  ;;  %733 = vst [vmem:[#allocation19] sm:$0xff] %v705_v2  ;;  %p1222_p13 = scmp.ne.s32.totalorder %s777_s14, %s1221_s19  ;;  %s741_s18 = int_to_ptr.vmem [resolvable:$true] %s740_s18 }
 0x35c   :  { %v726_v5 = vadd.f32 %v724_v3, %v721_v63  ;;  %p1226_p0 = scmp.lt.s32.totalorder %s777_s14, %s777_s14  ;;  %p1227_p1 = scmp.lt.s32.totalorder %s1221_s19, %s1221_s19 }
 0x35e   :  { %p1228_p2 = por %p1227_p1, %p1226_p0 }
 0x360   :  { %p1229_p3 = pnand %p1228_p2, %p1222_p13 }
 0x362   :  { %1232 = shalt.err (!%p1229_p3)
}
 0x363   :  { %s1233_s22 = scalar_lea.hbm %s1642_s13, 256 }
 0x364   :  { %p1234_p4 = scmp.ne.s32.totalorder %s1642_s13, %s1233_s22  ;;  %p1237_p5 = scmp.lt.u32.totalorder %s1233_s22, %s1642_s13 }
 0x366   :  { %p1239_p6 = pnand %p1237_p5, %p1234_p4 }
 0x368   :  { %1242 = shalt.err (!%p1239_p6)
}
 0x369   :  { %782 = dma.vmem_to_hbm [thread:$0]  %s777_s14, 256, %s1642_s13, [#allocation20], %s1283_s20, %s1283_s20, %s1284_s21   ;;  %v725_v6 = vadd.f32 %v723_v4, %v720_v0  ;;  %728 = vst [vmem:[#allocation15 + $0x8] sm:$0xff] %v726_v5 }
 0x36a   :  { %s1243_s28 = scalar_lea.vmem %s741_s18, 256  ;;  %p1248_p8 = scmp.lt.s32.totalorder %s741_s18, %s741_s18 }
 0x36b   :  { %727 = vst [vmem:[#allocation15] sm:$0xff] %v725_v6  ;;  %p1244_p7 = scmp.ne.s32.totalorder %s741_s18, %s1243_s28  ;;  %p1249_p9 = scmp.lt.s32.totalorder %s1243_s28, %s1243_s28 }
 0x36d   :  { %p1250_p10 = por %p1249_p9, %p1248_p8 }
 0x36f   :  { %p1251_p11 = pnand %p1250_p10, %p1244_p7 }
 0x371   :  { %1254 = shalt.err (!%p1251_p11)
}
 0x372   :  { %s1255_s30 = scalar_lea.hbm %s1639_s10, 256 }
 0x373   :  { %p1256_p12 = scmp.ne.s32.totalorder %s1639_s10, %s1255_s30  ;;  %p1259_p13 = scmp.lt.u32.totalorder %s1255_s30, %s1639_s10 }
 0x375   :  { %p1261_p0 = pnand %p1259_p13, %p1256_p12 }
 0x377   :  { %1264 = shalt.err (!%p1261_p0)
}
 0x378   :  { %746 = dma.vmem_to_hbm [thread:$0]  %s741_s18, 256, %s1639_s10, [#allocation4], %s1283_s20, %s1283_s20, %s1284_s21  }
 0x379   :  { %1275 = dma.done.wait [#allocation4], 256  }
 0x37a   :  { %1276 = vsyncadd [#allocation4], 4294967040 }
 0x37b   :  { %1277 = dma.done.wait [#allocation17], 512  }
 0x37c   :  { %1278 = vsyncadd [#allocation17], 4294966784 }
 0x37d   :  { %1279 = dma.done.wait [#allocation20], 256  }
 0x37e   :  { %1280 = vsyncadd [#allocation20], 4294967040 }
 0x37f   :  { %795 = vsyncpa [#allocation3], 1 }
 0x380   :  { %796 = vsyncpa [#allocation8], 1 }
 0x381   :  { %797 = vsyncpa [#allocation11], 1 }
 0x382   :  { %798 = vsyncpa [#allocation14], 1 }
 0x383   :  { %799 = vsyncpa [#allocation4], 1 }
 0x384   :  { %800 = vsyncpa [#allocation17], 1 }
 0x385   :  { %801 = vsyncpa [#allocation20], 1 }
 0x386   :  { %802 = vsyncpa [#allocation5], 1 }

</bundles_post_ra>
